<compile_context>
chip_gen: v7x
topology: tpu7x:2x2x1
jax: 0.10.0
libtpu: 0.0.40
codegen_flags: <defaults>
</compile_context>

<pallas_src>
import jax
import jax.numpy as jnp
from jax.experimental import pallas as pl
from jax.experimental.pallas import tpu as pltpu


def _nmse_kernel(x_ref, y_ref, o_ref):
    # One grid step owns a full (tile_rows, D) slab: do the whole reduction here.
    x = x_ref[...].astype(jnp.float32)
    y = y_ref[...].astype(jnp.float32)
    diff = y - x
    num = jnp.sum(diff * diff, axis=-1, keepdims=True)   # (tile_rows, 1)
    den = jnp.sum(y * y, axis=-1, keepdims=True)         # (tile_rows, 1)
    o_ref[...] = (num / den).astype(o_ref.dtype)


def _choose_tile_rows(R, D, itemsize, vmem_target_bytes):
    """Largest row tile that (a) divides R, (b) is a multiple of 8 (sublane)
    or equals R, and (c) keeps 2 inputs x 2 pipeline buffers within budget."""
    bytes_per_row = 4 * D * itemsize          # 2 inputs * 2 buffers
    max_rows = max(8, vmem_target_bytes // bytes_per_row)
    if R <= max_rows:
        return R
    t = (min(max_rows, R) // 8) * 8
    while t >= 8:
        if R % t == 0:
            return t
        t -= 8
    # No sublane-aligned divisor (e.g. odd R): fall back to one full block.
    return R


def nmse(x, y, *, vmem_target_bytes=24 * 1024 * 1024):
    """Pallas NMSE over the last axis (PyTorch dim=2 for 3-D inputs)."""
    assert x.shape == y.shape and x.ndim == 3
    B, H, D = x.shape
    R = B * H

    # Free wrapper-side plumbing: present the kernel with contiguous rows.
    xf = x.reshape(R, D)
    yf = y.reshape(R, D)

    itemsize = max(jnp.dtype(x.dtype).itemsize, jnp.dtype(y.dtype).itemsize)
    tile_rows = _choose_tile_rows(R, D, itemsize, vmem_target_bytes)
    grid = (R // tile_rows,)

    grid_spec = pltpu.PrefetchScalarGridSpec(
        num_scalar_prefetch=0,
        grid=grid,
        in_specs=[
            pl.BlockSpec((tile_rows, D), lambda i: (i, 0)),
            pl.BlockSpec((tile_rows, D), lambda i: (i, 0)),
        ],
        out_specs=pl.BlockSpec((tile_rows, 1), lambda i: (i, 0)),
    )

    out = pl.pallas_call(
        _nmse_kernel,
        out_shape=jax.ShapeDtypeStruct((R, 1), jnp.float32),
        grid_spec=grid_spec,
        compiler_params=pltpu.CompilerParams(
            # Rows are independent -> parallel axis (uses both TCs on v7x).
            dimension_semantics=("parallel",),
            # Safe on all generations: well under 64 MiB (v7x) / 128 MiB (v5e/v6e),
            # above the 16 MiB default scoped limit on v5e.
            vmem_limit_bytes=48 * 1024 * 1024,
        ),
    )(xf, yf)

    return out.reshape(B, H)


if __name__ == "__main__":
    key = jax.random.PRNGKey(0)
    kx, ky, kx2, ky2 = jax.random.split(key, 4)

    # Primary check: shape implied by the forward pass (B, H, D), reduce over D.
    B, H, D = 2, 8, 256
    x = jax.random.normal(kx, (B, H, D), dtype=jnp.float32)
    y = jax.random.normal(ky, (B, H, D), dtype=jnp.float32)

    out = nmse(x, y)
    jax.block_until_ready(out)

    ref = jnp.sum((y - x) ** 2, axis=2) / jnp.sum(y ** 2, axis=2)
    assert out.shape == (B, H)
    assert jnp.allclose(out, ref, rtol=1e-5, atol=1e-5)

    # Secondary check: force a multi-step row-tiled grid (tiny VMEM budget).
    B2, H2, D2 = 4, 16, 128
    x2 = jax.random.normal(kx2, (B2, H2, D2), dtype=jnp.float32)
    y2 = jax.random.normal(ky2, (B2, H2, D2), dtype=jnp.float32)
    out2 = nmse(x2, y2, vmem_target_bytes=16 * 1024)   # -> tile_rows=8, grid=(8,)
    jax.block_until_ready(out2)
    ref2 = jnp.sum((y2 - x2) ** 2, axis=2) / jnp.sum(y2 ** 2, axis=2)
    assert out2.shape == (B2, H2)
    assert jnp.allclose(out2, ref2, rtol=1e-5, atol=1e-5)

    print("KERNEL_OK")
</pallas_src>

<mosaic_0001>
module attributes {stable_mosaic.version = 11 : i64} {
  func.func @_nmse_kernel(%arg0: i32, %arg1: memref<16x256xf32, #tpu.memory_space<vmem>>, %arg2: memref<16x256xf32, #tpu.memory_space<vmem>>, %arg3: memref<16x1xf32, #tpu.memory_space<vmem>>) attributes {dimension_semantics = [#tpu.dimension_semantics<parallel>], iteration_bounds = array<i64: 1>, scalar_prefetch = 0 : i64, scratch_operands = 0 : i64, tpu.core_type = #tpu.core_type<tc>, window_params = [{transform_indices = @transform_0, window_bounds = array<i64: 16, 256>}, {transform_indices = @transform_1, window_bounds = array<i64: 16, 256>}, {transform_indices = @transform_2, window_bounds = array<i64: 16, 1>}]} {
    %c0 = arith.constant 0 : index
    %c0_0 = arith.constant 0 : index
    %0 = vector.load %arg1[%c0, %c0_0] : memref<16x256xf32, #tpu.memory_space<vmem>>, vector<16x256xf32>
    %c0_1 = arith.constant 0 : index
    %c0_2 = arith.constant 0 : index
    %1 = vector.load %arg2[%c0_1, %c0_2] : memref<16x256xf32, #tpu.memory_space<vmem>>, vector<16x256xf32>
    %2 = arith.subf %1, %0 : vector<16x256xf32>
    %3 = arith.mulf %2, %2 : vector<16x256xf32>
    %cst = arith.constant dense<0.000000e+00> : vector<16xf32>
    %4 = vector.multi_reduction <add>, %3, %cst [1] : vector<16x256xf32> to vector<16xf32>
    %5 = vector.shape_cast %4 : vector<16xf32> to vector<16x1xf32>
    %6 = arith.mulf %1, %1 : vector<16x256xf32>
    %cst_3 = arith.constant dense<0.000000e+00> : vector<16xf32>
    %7 = vector.multi_reduction <add>, %6, %cst_3 [1] : vector<16x256xf32> to vector<16xf32>
    %8 = vector.shape_cast %7 : vector<16xf32> to vector<16x1xf32>
    %9 = arith.divf %5, %8 : vector<16x1xf32>
    %c0_4 = arith.constant 0 : index
    %c0_5 = arith.constant 0 : index
    %10 = vector.load %arg3[%c0_4, %c0_5] : memref<16x1xf32, #tpu.memory_space<vmem>>, vector<16x1xf32>
    tpu.vector_store %arg3[%c0_4, %c0_5], %9 {strides = array<i32>} : memref<16x1xf32, #tpu.memory_space<vmem>>, vector<16x1xf32>,
    return
  }
  func.func @transform_0(%arg0: i32) -> (i32, i32) {
    %c0_i32 = arith.constant 0 : i32
    %c0_i32_0 = arith.constant 0 : i32
    return %arg0, %c0_i32 : i32, i32
  }
  func.func @transform_1(%arg0: i32) -> (i32, i32) {
    %c0_i32 = arith.constant 0 : i32
    %c0_i32_0 = arith.constant 0 : i32
    return %arg0, %c0_i32 : i32, i32
  }
  func.func @transform_2(%arg0: i32) -> (i32, i32) {
    %c0_i32 = arith.constant 0 : i32
    %c0_i32_0 = arith.constant 0 : i32
    return %arg0, %c0_i32 : i32, i32
  }
}

</mosaic_0001>

<bundles_post_ra>
// kernel: tpu_custom_call.1
= control target key start
LH: loop header
LB: loop body
LE: loop exit
PB: predicated region body
PF: predicated region fallthrough
CT: control target
= control target key end

     0   :  { %7 = vsyncpa [#allocation3], 0  ;;  %s189_s0 = inlined_call_operand.hbm [shape: f32[16,256], index: 0, kind: input, shape index: {}]   ;;  %s190_s1 = inlined_call_operand.hbm [shape: f32[16,256], index: 1, kind: input, shape index: {}]   ;;  %s191_s2 = inlined_call_operand.vmem [shape: f32[16,1], index: 2, kind: output, shape index: {}]  }
   0x1   :  { %8 = vsyncpa [#allocation5], 0  ;;  %s140_s9 = smov [#allocation2]   ;;  %s92_s13 = scalar_lea.hbm %s189_s0, 512 }
   0x2   :  { %s14_s10 = sshll.u32 %s140_s9, 4  ;;  %p93_p0 = scmp.ne.s32.totalorder %s189_s0, %s92_s13  ;;  %s15_s10 = int_to_ptr.vmem [resolvable:$true] %s14_s10 }
   0x3   :  { %p96_p1 = scmp.lt.u32.totalorder %s92_s13, %s189_s0 }
   0x5   :  { %p98_p2 = pnand %p96_p1, %p93_p0 }
   0x7   :  { %101 = shalt.err (!%p98_p2)
}
   0x8   :  { %s102_s18 = scalar_lea.vmem %s15_s10, 512  ;;  %p107_p4 = scmp.lt.s32.totalorder %s15_s10, %s15_s10 }
   0x9   :  { %p103_p3 = scmp.ne.s32.totalorder %s15_s10, %s102_s18  ;;  %p108_p5 = scmp.lt.s32.totalorder %s102_s18, %s102_s18 }
   0xb   :  { %p109_p6 = por %p108_p5, %p107_p4 }
   0xd   :  { %p110_p7 = pnand %p109_p6, %p103_p3 }
   0xf   :  { %113 = shalt.err (!%p110_p7)
}
  0x10   :  { %s141_s19 = smov 256   ;;  %s142_s20 = smov 16  }
  0x11   :  { %20 = dma.hbm_to_vmem [thread:$0]  %s189_s0, 512, %s15_s10, [#allocation3], %s141_s19, %s141_s19, %s142_s20  }
  0x12   :  { %s143_s23 = smov [#allocation4]   ;;  %s114_s27 = scalar_lea.hbm %s190_s1, 512 }
  0x13   :  { %s26_s24 = sshll.u32 %s143_s23, 4  ;;  %p115_p8 = scmp.ne.s32.totalorder %s190_s1, %s114_s27  ;;  %s27_s24 = int_to_ptr.vmem [resolvable:$true] %s26_s24 }
  0x14   :  { %p118_p9 = scmp.lt.u32.totalorder %s114_s27, %s190_s1 }
  0x16   :  { %p120_p10 = pnand %p118_p9, %p115_p8 }
  0x18   :  { %123 = shalt.err (!%p120_p10)
}
  0x19   :  { %s124_s4 = scalar_lea.vmem %s27_s24, 512  ;;  %p129_p12 = scmp.lt.s32.totalorder %s27_s24, %s27_s24 }
  0x1a   :  { %p125_p11 = scmp.ne.s32.totalorder %s27_s24, %s124_s4  ;;  %p130_p13 = scmp.lt.s32.totalorder %s124_s4, %s124_s4 }
  0x1c   :  { %p131_p0 = por %p130_p13, %p129_p12 }
  0x1e   :  { %p132_p1 = pnand %p131_p0, %p125_p11 }
  0x20   :  { %135 = shalt.err (!%p132_p1)
}
  0x21   :  { %32 = dma.hbm_to_vmem [thread:$0]  %s190_s1, 512, %s27_s24, [#allocation5], %s141_s19, %s141_s19, %s142_s20  }
  0x22   :  { %136 = dma.done.wait [#allocation3], 512  }
  0x23   :  { %137 = vsyncadd [#allocation3], 4294966784 }
  0x24   :  { %138 = dma.done.wait [#allocation5], 512  }
  0x25   :  { %139 = vsyncadd [#allocation5], 4294966784  ;;  %v43_v0 = vld [vmem:[#allocation4] sm:$0xff]  ;;  %v44_v1 = vld [vmem:[#allocation4 + $0x8] sm:$0xff]  ;;  %vm75_vm0 = vcmask 7168  }
  0x26   :  { %v45_v2 = vld [vmem:[#allocation4 + $0x10] sm:$0xff]  ;;  %v61_v3 = vmul.f32 %v43_v0, %v43_v0  ;;  %v62_v4 = vmul.f32 %v44_v1, %v44_v1  ;;  %v46_v5 = vld [vmem:[#allocation4 + $0x18] sm:$0xff]  ;;  %v39_v7 = vld [vmem:[#allocation2] sm:$0xff] }
  0x27   :  { %v63_v6 = vmul.f32 %v45_v2, %v45_v2  ;;  %v40_v8 = vld [vmem:[#allocation2 + $0x8] sm:$0xff]  ;;  %v64_v9 = vmul.f32 %v46_v5, %v46_v5  ;;  %v47_v10 = vsub.f32 %v43_v0, %v39_v7  ;;  %v41_v12 = vld [vmem:[#allocation2 + $0x10] sm:$0xff]  ;;  %v42_v13 = vld [vmem:[#allocation2 + $0x18] sm:$0xff] }
  0x28   :  { %v48_v11 = vsub.f32 %v44_v1, %v40_v8  ;;  %v65_v14 = vadd.f32 %v62_v4, %v61_v3  ;;  %v49_v15 = vsub.f32 %v45_v2, %v41_v12  ;;  %v50_v16 = vsub.f32 %v46_v5, %v42_v13 }
  0x29   :  { %v51_v17 = vmul.f32 %v47_v10, %v47_v10  ;;  %v68_v19 = vadd.f32 %v64_v9, %v63_v6 }
  0x2a   :  { %v52_v18 = vmul.f32 %v48_v11, %v48_v11  ;;  %66 = vadd.xlane.f32.xlu0 %v65_v14  ;;  %v53_v20 = vmul.f32 %v49_v15, %v49_v15  ;;  %v54_v21 = vmul.f32 %v50_v16, %v50_v16 }
  0x2c   :  { %v55_v22 = vadd.f32 %v52_v18, %v51_v17  ;;  %v58_v23 = vadd.f32 %v54_v21, %v53_v20 }
  0x2e   :  { %56 = vadd.xlane.f32.xlu1 %v55_v22  ;;  %69 = vadd.xlane.f32.xlu0 %v68_v19 }
  0x32   :  { %59 = vadd.xlane.f32.xlu1 %v58_v23 }
  0xb7   :  { %v67_v24 = vpop.xlane.xlu0 %66 }
  0xb8   :  { %88 = vrcp.f32 %v67_v24 }
  0xbb   :  { %v70_v25 = vpop.xlane.xlu0 %69  ;;  %v57_v26 = vpop.xlane.xlu1 %56 }
  0xbc   :  { %90 = vrcp.f32 %v70_v25 }
  0xbf   :  { %v60_v29 = vpop.xlane.xlu1 %59 }
  0xc2   :  { %v89_v27 = vpop.eup %88 }
  0xc3   :  { %v72_v28 = vmul.f32 %v89_v27, %v57_v26 }
  0xc5   :  { %76 = vst.msk [vmem:[%s191_s2] sm:$0xff] %vm75_vm0, %v72_v28 }
  0xc6   :  { %v91_v30 = vpop.eup %90 }
  0xc7   :  { %v74_v31 = vmul.f32 %v91_v30, %v60_v29 }
  0xc9   :  { %77 = vst.msk [vmem:[%s191_s2 + $0x8] sm:$0xff] %vm75_vm0, %v74_v31 }
  0xca   :  { %82 = vsyncpa [#allocation3], 1 }
  0xcb   :  { %83 = vsyncpa [#allocation5], 1 }

</bundles_post_ra>
